<compile_context>
chip_gen: v7x
topology: tpu7x:2x2x1
jax: 0.10.0
libtpu: 0.0.40
codegen_flags: <defaults>
</compile_context>

<pallas_src>
import functools

import jax
import jax.numpy as jnp
from jax.experimental import pallas as pl
from jax.experimental.pallas import tpu as pltpu


def _round_up(x, m):
    return (x + m - 1) // m * m


# ---------------------------------------------------------------------------
# Path A kernel: full spatial row (HW) per block, single fused pass.
# ---------------------------------------------------------------------------
def _adain_fused_kernel(x_ref, wb_ref, o_ref, *, eps):
    # x_ref/o_ref: (TBC, HW); wb_ref: (TBC, 2) with [:,0]=weight, [:,1]=bias.
    x = x_ref[...].astype(jnp.float32)
    m = jnp.mean(x, axis=-1, keepdims=True)                  # cross-lane reduce (XLU)
    xm = x - m
    v = jnp.mean(xm * xm, axis=-1, keepdims=True)            # biased variance, two-pass
    scale = (wb_ref[:, 0:1].astype(jnp.float32) + 1.0) * jax.lax.rsqrt(v + eps)  # EUP
    shift = wb_ref[:, 1:2].astype(jnp.float32) - m * scale
    # x*scale + shift' form: no (x - m) full-tile temp needed in the epilogue.
    o_ref[...] = (x * scale + shift).astype(o_ref.dtype)


# ---------------------------------------------------------------------------
# Path B kernels: HW chunked (large spatial extents).  Pass 1: per-row stats
# accumulated across HW chunks -> per-row (scale, shift).  Pass 2: normalize.
# ---------------------------------------------------------------------------
def _adain_stats_kernel(x_ref, wb_ref, ss_ref, sum_sc, sumsq_sc, *, eps, hw, thw):
    k = pl.program_id(1)

    @pl.when(k == 0)
    def _():
        sum_sc[...] = jnp.zeros_like(sum_sc)
        sumsq_sc[...] = jnp.zeros_like(sumsq_sc)

    x = x_ref[...].astype(jnp.float32)                       # (TBC, THW)
    if hw % thw != 0:
        # Partial last HW chunk: mask out-of-range lanes so they contribute zero.
        col = k * thw + jax.lax.broadcasted_iota(jnp.int32, x.shape, 1)
        x = jnp.where(col < hw, x, 0.0)
    sum_sc[...] += jnp.sum(x, axis=-1, keepdims=True)
    sumsq_sc[...] += jnp.sum(x * x, axis=-1, keepdims=True)

    @pl.when(k == pl.num_programs(1) - 1)
    def _():
        inv_n = jnp.float32(1.0 / hw)
        m = sum_sc[...] * inv_n
        v = jnp.maximum(sumsq_sc[...] * inv_n - m * m, 0.0)   # biased variance
        scale = (wb_ref[:, 0:1].astype(jnp.float32) + 1.0) * jax.lax.rsqrt(v + eps)
        shift = wb_ref[:, 1:2].astype(jnp.float32) - m * scale
        ss_ref[...] = jnp.concatenate([scale, shift], axis=-1)


def _adain_apply_kernel(x_ref, ss_ref, o_ref):
    x = x_ref[...].astype(jnp.float32)
    o_ref[...] = (x * ss_ref[:, 0:1] + ss_ref[:, 1:2]).astype(o_ref.dtype)


# ---------------------------------------------------------------------------
# Tiling heuristics.
# ---------------------------------------------------------------------------
def _choose_rows(BC, row_bytes, target_bytes, min_steps=8):
    """Rows per grid step: multiple of 8 (sublane), ~target_bytes per block, and
    capped so the grid has >= ~min_steps steps (keeps both v7x TCs busy)."""
    rows = max(8, (target_bytes // max(1, row_bytes)) // 8 * 8)
    cap = max(8, (BC // min_steps) // 8 * 8)
    return max(8, min(rows, cap, _round_up(BC, 8)))


def adaptive_instance_norm(x, weight, bias, eps=1e-5, target_block_bytes=2 << 20):
    """AdaIN forward.

    x      : (B, C, H, W)  NCHW
    weight : (B*C,)        per-instance scale (effective scale = weight + 1)
    bias   : (B*C,)        per-instance shift
    """
    B, C, H, W = x.shape
    BC, HW = B * C, H * W
    itemsize = jnp.dtype(x.dtype).itemsize

    x2 = x.reshape(BC, HW)  # metadata-only view of contiguous NCHW
    # One stacked (BC, 2) parameter array -> a single small resident block per BC tile.
    wb = jnp.stack([weight.astype(jnp.float32), bias.astype(jnp.float32)], axis=-1)

    # Budget in f32-equivalent bytes so bf16/fp8 inputs account for their f32 temps.
    row_bytes_f32 = HW * 4
    cparams = dict(vmem_limit_bytes=32 * 1024 * 1024)  # safe on v5e/v6e/v7x

    if 8 * row_bytes_f32 <= target_block_bytes:
        # ---------------- Path A: full HW row per block, single fused pass ----------
        tbc = _choose_rows(BC, row_bytes_f32, target_block_bytes)
        out2 = pl.pallas_call(
            functools.partial(_adain_fused_kernel, eps=eps),
            out_shape=jax.ShapeDtypeStruct((BC, HW), x.dtype),
            grid=(pl.cdiv(BC, tbc),),
            in_specs=[
                pl.BlockSpec((tbc, HW), lambda i: (i, 0)),
                pl.BlockSpec((tbc, 2), lambda i: (i, 0)),
            ],
            out_specs=pl.BlockSpec((tbc, HW), lambda i: (i, 0)),
            compiler_params=pltpu.CompilerParams(
                dimension_semantics=("parallel",), **cparams),
            cost_estimate=pl.CostEstimate(
                flops=8 * BC * HW,
                transcendentals=BC,
                bytes_accessed=2 * BC * HW * itemsize + BC * 2 * 4),
        )(x2, wb)
        return out2.reshape(B, C, H, W)

    # ---------------- Path B: chunk HW; two passes (stats then normalize) -----------
    thw = max(128, (target_block_bytes // (8 * 4)) // 128 * 128)
    thw = min(thw, max(128, HW // 128 * 128))
    tbc = max(8, (target_block_bytes // max(1, thw * 4)) // 8 * 8)
    tbc = min(tbc, _round_up(BC, 8))
    grid = (pl.cdiv(BC, tbc), pl.cdiv(HW, thw))

    ss = pl.pallas_call(
        functools.partial(_adain_stats_kernel, eps=eps, hw=HW, thw=thw),
        out_shape=jax.ShapeDtypeStruct((BC, 2), jnp.float32),
        grid=grid,
        in_specs=[
            pl.BlockSpec((tbc, thw), lambda i, k: (i, k)),
            pl.BlockSpec((tbc, 2), lambda i, k: (i, 0)),
        ],
        out_specs=pl.BlockSpec((tbc, 2), lambda i, k: (i, 0)),
        scratch_shapes=[pltpu.VMEM((tbc, 1), jnp.float32),
                        pltpu.VMEM((tbc, 1), jnp.float32)],
        compiler_params=pltpu.CompilerParams(
            dimension_semantics=("parallel", "arbitrary"), **cparams),
        cost_estimate=pl.CostEstimate(
            flops=3 * BC * HW,
            transcendentals=BC,
            bytes_accessed=BC * HW * itemsize + 2 * BC * 2 * 4),
    )(x2, wb)

    out2 = pl.pallas_call(
        _adain_apply_kernel,
        out_shape=jax.ShapeDtypeStruct((BC, HW), x.dtype),
        grid=grid,
        in_specs=[
            pl.BlockSpec((tbc, thw), lambda i, k: (i, k)),
            pl.BlockSpec((tbc, 2), lambda i, k: (i, 0)),
        ],
        out_specs=pl.BlockSpec((tbc, thw), lambda i, k: (i, k)),
        compiler_params=pltpu.CompilerParams(
            dimension_semantics=("parallel", "parallel"), **cparams),
        cost_estimate=pl.CostEstimate(
            flops=2 * BC * HW,
            transcendentals=0,
            bytes_accessed=2 * BC * HW * itemsize + BC * 2 * 4),
    )(x2, ss)
    return out2.reshape(B, C, H, W)


def _adain_reference(x, weight, bias, eps=1e-5):
    """Pure-JAX reference matching the PyTorch forward."""
    B, C, H, W = x.shape
    xr = x.reshape(B * C, H * W).astype(jnp.float32)
    m = xr.mean(axis=1, keepdims=True)
    v = ((xr - m) ** 2).mean(axis=1, keepdims=True)  # biased variance
    out = (xr - m) / jnp.sqrt(v + eps) * (weight + 1.0)[:, None] + bias[:, None]
    return out.reshape(B, C, H, W).astype(x.dtype)


if __name__ == "__main__":
    key = jax.random.PRNGKey(0)
    kx, kw, kb, kx2 = jax.random.split(key, 4)

    B, C, H, W = 2, 4, 16, 16
    weight = 0.1 * jax.random.normal(kw, (B * C,), dtype=jnp.float32)
    bias = 0.1 * jax.random.normal(kb, (B * C,), dtype=jnp.float32)

    # Test 1: Path A (full-HW blocks, single fused pass).
    x = jax.random.normal(kx, (B, C, H, W), dtype=jnp.float32)
    out = jax.block_until_ready(adaptive_instance_norm(x, weight, bias, eps=1e-5))
    ref = _adain_reference(x, weight, bias, eps=1e-5)
    assert out.shape == (B, C, H, W)
    assert jnp.allclose(out, ref, atol=1e-4, rtol=1e-4), "Pallas AdaIN (path A) mismatch"

    # Test 2: force the HW-chunked two-pass path (the large-spatial / v7x-VMEM path),
    # including a masked partial last HW chunk (HW = 16*20 = 320 = 2*128 + 64).
    H2, W2 = 16, 20
    x2 = jax.random.normal(kx2, (B, C, H2, W2), dtype=jnp.float32)
    out2 = jax.block_until_ready(
        adaptive_instance_norm(x2, weight, bias, eps=1e-5,
                               target_block_bytes=8 * 128 * 4))
    ref2 = _adain_reference(x2, weight, bias, eps=1e-5)
    assert out2.shape == (B, C, H2, W2)
    assert jnp.allclose(out2, ref2, atol=1e-4, rtol=1e-4), "Pallas AdaIN (path B) mismatch"

    print("KERNEL_OK")
</pallas_src>

<mosaic_0001>
module attributes {stable_mosaic.version = 11 : i64} {
  func.func @_adain_fused_kernel(%arg0: i32, %arg1: memref<8x256xf32, #tpu.memory_space<vmem>>, %arg2: memref<8x2xf32, #tpu.memory_space<vmem>>, %arg3: memref<8x256xf32, #tpu.memory_space<vmem>>) attributes {dimension_semantics = [#tpu.dimension_semantics<parallel>], iteration_bounds = array<i64: 1>, scalar_prefetch = 0 : i64, scratch_operands = 0 : i64, tpu.core_type = #tpu.core_type<tc>, window_params = [{transform_indices = @transform_0, window_bounds = array<i64: 8, 256>}, {transform_indices = @transform_1, window_bounds = array<i64: 8, 2>}, {transform_indices = @transform_2, window_bounds = array<i64: 8, 256>}]} {
    %c0 = arith.constant 0 : index
    %c0_0 = arith.constant 0 : index
    %0 = vector.load %arg1[%c0, %c0_0] : memref<8x256xf32, #tpu.memory_space<vmem>>, vector<8x256xf32>
    %cst = arith.constant dense<0.000000e+00> : vector<8xf32>
    %1 = vector.multi_reduction <add>, %0, %cst [1] : vector<8x256xf32> to vector<8xf32>
    %2 = vector.shape_cast %1 : vector<8xf32> to vector<8x1xf32>
    %cst_1 = arith.constant 2.560000e+02 : f32
    %3 = vector.broadcast %cst_1 : f32 to vector<8x1xf32>
    %4 = arith.divf %2, %3 : vector<8x1xf32>
    %5 = vector.broadcast %4 : vector<8x1xf32> to vector<8x256xf32>
    %6 = arith.subf %0, %5 : vector<8x256xf32>
    %7 = arith.mulf %6, %6 : vector<8x256xf32>
    %cst_2 = arith.constant dense<0.000000e+00> : vector<8xf32>
    %8 = vector.multi_reduction <add>, %7, %cst_2 [1] : vector<8x256xf32> to vector<8xf32>
    %9 = vector.shape_cast %8 : vector<8xf32> to vector<8x1xf32>
    %cst_3 = arith.constant 2.560000e+02 : f32
    %10 = vector.broadcast %cst_3 : f32 to vector<8x1xf32>
    %11 = arith.divf %9, %10 : vector<8x1xf32>
    %c0_4 = arith.constant 0 : index
    %c0_5 = arith.constant 0 : index
    %12 = vector.load %arg2[%c0_4, %c0_5] : memref<8x2xf32, #tpu.memory_space<vmem>>, vector<8x1xf32>
    %cst_6 = arith.constant 1.000000e+00 : f32
    %13 = vector.broadcast %cst_6 : f32 to vector<8x1xf32>
    %14 = arith.addf %12, %13 : vector<8x1xf32>
    %cst_7 = arith.constant 9.99999974E-6 : f32
    %15 = vector.broadcast %cst_7 : f32 to vector<8x1xf32>
    %16 = arith.addf %11, %15 : vector<8x1xf32>
    %17 = math.rsqrt %16 : vector<8x1xf32>
    %18 = arith.mulf %14, %17 : vector<8x1xf32>
    %c0_8 = arith.constant 0 : index
    %c1 = arith.constant 1 : index
    %19 = vector.load %arg2[%c0_8, %c1] : memref<8x2xf32, #tpu.memory_space<vmem>>, vector<8x1xf32>
    %20 = arith.mulf %4, %18 : vector<8x1xf32>
    %21 = arith.subf %19, %20 : vector<8x1xf32>
    %22 = vector.broadcast %18 : vector<8x1xf32> to vector<8x256xf32>
    %23 = arith.mulf %0, %22 : vector<8x256xf32>
    %24 = vector.broadcast %21 : vector<8x1xf32> to vector<8x256xf32>
    %25 = arith.addf %23, %24 : vector<8x256xf32>
    %c0_9 = arith.constant 0 : index
    %c0_10 = arith.constant 0 : index
    %26 = vector.load %arg3[%c0_9, %c0_10] : memref<8x256xf32, #tpu.memory_space<vmem>>, vector<8x256xf32>
    tpu.vector_store %arg3[%c0_9, %c0_10], %25 {strides = array<i32>} : memref<8x256xf32, #tpu.memory_space<vmem>>, vector<8x256xf32>,
    return
  }
  func.func @transform_0(%arg0: i32) -> (i32, i32) {
    %c0_i32 = arith.constant 0 : i32
    %c0_i32_0 = arith.constant 0 : i32
    return %arg0, %c0_i32 : i32, i32
  }
  func.func @transform_1(%arg0: i32) -> (i32, i32) {
    %c0_i32 = arith.constant 0 : i32
    %c0_i32_0 = arith.constant 0 : i32
    return %arg0, %c0_i32 : i32, i32
  }
  func.func @transform_2(%arg0: i32) -> (i32, i32) {
    %c0_i32 = arith.constant 0 : i32
    %c0_i32_0 = arith.constant 0 : i32
    return %arg0, %c0_i32 : i32, i32
  }
}

</mosaic_0001>

<bundles_post_ra>
// kernel: tpu_custom_call.1
= control target key start
LH: loop header
LB: loop body
LE: loop exit
PB: predicated region body
PF: predicated region fallthrough
CT: control target
= control target key end

     0   :  { %7 = vsyncpa [#allocation3], 0  ;;  %s185_s0 = inlined_call_operand.hbm [shape: f32[8,256], index: 0, kind: input, shape index: {}]   ;;  %s186_s1 = inlined_call_operand.vmem [shape: f32[8,2], index: 1, kind: input, shape index: {}]   ;;  %s187_s2 = inlined_call_operand.hbm [shape: f32[8,256], index: 2, kind: output, shape index: {}]  }
   0x1   :  { %8 = vsyncpa [#allocation4], 0  ;;  %s138_s9 = smov [#allocation2]   ;;  %s90_s13 = scalar_lea.hbm %s185_s0, 256 }
   0x2   :  { %s15_s10 = sshll.u32 %s138_s9, 4  ;;  %p91_p0 = scmp.ne.s32.totalorder %s185_s0, %s90_s13  ;;  %s16_s10 = int_to_ptr.vmem [resolvable:$true] %s15_s10 }
   0x3   :  { %p94_p1 = scmp.lt.u32.totalorder %s90_s13, %s185_s0 }
   0x5   :  { %p96_p2 = pnand %p94_p1, %p91_p0 }
   0x7   :  { %99 = shalt.err (!%p96_p2)
}
   0x8   :  { %s100_s18 = scalar_lea.vmem %s16_s10, 256  ;;  %p105_p4 = scmp.lt.s32.totalorder %s16_s10, %s16_s10 }
   0x9   :  { %p101_p3 = scmp.ne.s32.totalorder %s16_s10, %s100_s18  ;;  %p106_p5 = scmp.lt.s32.totalorder %s100_s18, %s100_s18 }
   0xb   :  { %p107_p6 = por %p106_p5, %p105_p4 }
   0xd   :  { %p108_p7 = pnand %p107_p6, %p101_p3 }
   0xf   :  { %111 = shalt.err (!%p108_p7)
}
  0x10   :  { %18 = dma.hbm_to_vmem [thread:$0]  %s185_s0, 256, %s16_s10, [#allocation3]  }
  0x11   :  { %134 = dma.done.wait [#allocation3], 256  }
  0x12   :  { %135 = vsyncadd [#allocation3], 4294967040  ;;  %v24_v0 = vld [vmem:[#allocation2] sm:$0xff]  ;;  %v25_v1 = vld [vmem:[#allocation2 + $0x8] sm:$0xff]  ;;  %v139_v10 = vmov 0   ;;  %v140_v14 = vmov 1  }
  0x13   :  { %v26_v2 = vadd.f32 %v25_v1, %v24_v0  ;;  %86 = vset.pattern.permute.xlu1 %v139_v10  ;;  %87 = vset.pattern.permute.xlu0 %v140_v14  ;;  %v39_v15 = vld [vmem:[%s186_s1] sm:$0xff]  ;;  %s141_s22 = smov 1   ;;  %s142_s23 = smov [#allocation5]  }
  0x14   :  { %v40_v16 = vadd.f32 1.0, %v39_v15  ;;  %s72_s24 = sshll.u32 %s142_s23, 4  ;;  %s73_s24 = int_to_ptr.vmem [resolvable:$true] %s72_s24 }
  0x15   :  { %27 = vadd.xlane.f32.xlu0 %v26_v2  ;;  %s112_s1 = scalar_lea.vmem %s73_s24, 256  ;;  %p117_p9 = scmp.lt.s32.totalorder %s73_s24, %s73_s24 }
  0x16   :  { %p113_p8 = scmp.ne.s32.totalorder %s73_s24, %s112_s1  ;;  %p118_p10 = scmp.lt.s32.totalorder %s112_s1, %s112_s1 }
  0x18   :  { %p119_p11 = por %p118_p10, %p117_p9 }
  0x1a   :  { %p120_p12 = pnand %p119_p11, %p113_p8 }
  0xa2   :  { %v28_v3 = vpop.xlane.xlu0 %27 }
  0xa3   :  { %v30_v4 = vmul.f32 0.00390625, %v28_v3 }
  0xa5   :  { %v31_v5 = vsub.f32 %v24_v0, %v30_v4  ;;  %v32_v6 = vsub.f32 %v25_v1, %v30_v4 }
  0xa7   :  { %v33_v7 = vmul.f32 %v31_v5, %v31_v5  ;;  %v34_v8 = vmul.f32 %v32_v6, %v32_v6 }
  0xa9   :  { %v35_v9 = vadd.f32 %v34_v8, %v33_v7 }
  0xab   :  { %36 = vadd.xlane.f32.xlu0 %v35_v9 }
 0x138   :  { %v37_v11 = vpop.xlane.xlu0 %36 }
 0x139   :  { %v38_v12 = vmul.f32 0.00390625, %v37_v11 }
 0x13b   :  { %v41_v13 = vadd.f32 1e-05, %v38_v12 }
 0x13d   :  { %88 = vrsqrt.f32 %v41_v13 }
 0x147   :  { %v89_v17 = vpop.eup %88 }
 0x148   :  { %v43_v18 = vmul.f32 %v89_v17, %v40_v16 }
 0x14a   :  { %v44_v19 = vmul.f32 %v43_v18, %v30_v4 }
 0x14c   :  { %46 = vrot.lane.b32.xlu1 %v44_v19, %s141_s22 }
 0x150   :  { %52 = vperm.xlu1 %86, %v43_v18  }
 0x1be   :  { %v47_v20 = vpop.permute.xlu1 %46 }
 0x1bf   :  { %v49_v21 = vsub.f32 %v39_v15, %v47_v20 }
 0x1c1   :  { %59 = vperm.xlu0 %87, %v49_v21  }
 0x1cf   :  { %v53_v22 = vpop.permute.xlu1 %52 }
 0x1d0   :  { %v55_v23 = vmul.f32 %v53_v22, %v24_v0  ;;  %v56_v24 = vmul.f32 %v53_v22, %v25_v1 }
 0x240   :  { %v60_v25 = vpop.permute.xlu0 %59 }
 0x241   :  { %v62_v26 = vadd.f32 %v60_v25, %v55_v23  ;;  %v63_v27 = vadd.f32 %v60_v25, %v56_v24 }
 0x243   :  { %64 = vst [vmem:[#allocation5] sm:$0xff] %v62_v26  ;;  %65 = vst [vmem:[#allocation5 + $0x8] sm:$0xff] %v63_v27 }
 0x244   :  { %123 = shalt.err (!%p120_p12)
}
 0x245   :  { %s124_s27 = scalar_lea.hbm %s187_s2, 256 }
 0x246   :  { %p125_p13 = scmp.ne.s32.totalorder %s187_s2, %s124_s27  ;;  %p128_p0 = scmp.lt.u32.totalorder %s124_s27, %s187_s2 }
 0x248   :  { %p130_p1 = pnand %p128_p0, %p125_p13 }
 0x24a   :  { %133 = shalt.err (!%p130_p1)
}
 0x24b   :  { %75 = dma.vmem_to_hbm [thread:$0]  %s73_s24, 256, %s187_s2, [#allocation4]  }
 0x24c   :  { %136 = dma.done.wait [#allocation4], 256  }
 0x24d   :  { %137 = vsyncadd [#allocation4], 4294967040 }
 0x24e   :  { %79 = vsyncpa [#allocation3], 1 }
 0x24f   :  { %80 = vsyncpa [#allocation4], 1 }

</bundles_post_ra>
